<compile_context>
chip_gen: v7x
topology: tpu7x:2x2x1
jax: 0.10.0
libtpu: 0.0.40
codegen_flags: <defaults>
</compile_context>

<pallas_src>
import functools

import jax
import jax.numpy as jnp
from jax.experimental import pallas as pl
from jax.experimental.pallas import tpu as pltpu

SUBLANE = 8  # pad batch to a full sublane tile


def _gesture_lstm_kernel(x2d_ref, wih_ref, whh_ref, b_ref, wfc_ref, bfc_ref,
                         out_ref, *, seq_len, batch_padded, hidden_size):
    H = hidden_size
    BP = batch_padded

    # ---- Input projection for ALL timesteps in one MXU op (off the serial
    # chain). x2d is time-major flattened: row t*BP + b == x_padded[b, t, :].
    xp = (jnp.dot(x2d_ref[...], wih_ref[...],
                  preferred_element_type=jnp.float32)
          + b_ref[...])                                    # (T*BP, 4H) f32

    # Recurrent weight: loaded ONCE (bf16), held as a value across the
    # unrolled loop so the MXU RHS can stay stationary over timesteps.
    whh = whh_ref[...]                                     # (H, 4H) bf16

    # Lane mask selecting the tanh (g) half of the [g | o] activation slab.
    # Hoisted above the loop.
    lane = jax.lax.broadcasted_iota(jnp.int32, (BP, 2 * H), 1)
    g_mask = lane < H

    # ---- Recurrence: state in vregs, loop fully unrolled (T static, small).
    h = jnp.zeros((BP, H), jnp.float32)
    c = jnp.zeros((BP, H), jnp.float32)
    for t in range(seq_len):
        # bf16 operands, f32 accumulation: the per-step critical-path matmul.
        rec = jnp.dot(h.astype(jnp.bfloat16), whh,
                      preferred_element_type=jnp.float32)  # (BP, 4H)
        gates = xp[t * BP:(t + 1) * BP, :] + rec           # sublane-aligned slice

        # PyTorch gate order i, f, g, o:
        #   slab [i|f] -> all sigmoid (one full-vreg activation)
        #   slab [g|o] -> tanh|sigmoid, merged with a lane-masked select
        slab_if = gates[:, :2 * H]                         # (BP, 128)
        slab_go = gates[:, 2 * H:]                         # (BP, 128)
        act_if = jax.nn.sigmoid(slab_if)
        act_go = jnp.where(g_mask, jnp.tanh(slab_go), jax.nn.sigmoid(slab_go))

        i_g = act_if[:, :H]
        f_g = act_if[:, H:]
        g_g = act_go[:, :H]
        o_g = act_go[:, H:]
        c = f_g * c + i_g * g_g
        h = o_g * jnp.tanh(c)

    # ---- Final FC on h_T (single small masked store, once per call).
    out_ref[...] = (jnp.dot(h, wfc_ref[...],
                            preferred_element_type=jnp.float32)
                    + bfc_ref[...]).astype(out_ref.dtype)


def prepare_params(params):
    """One-time layout work (transposes, bias fusion, bf16 cast of whh).

    Run once at init / checkpoint-load time, NOT per forward call.
    """
    H = params["w_hh"].shape[1]
    O = params["w_fc"].shape[0]
    return {
        "wih_t": jnp.transpose(params["w_ih"], (1, 0)).astype(jnp.float32),   # (F, 4H)
        "whh_t": jnp.transpose(params["w_hh"], (1, 0)).astype(jnp.bfloat16),  # (H, 4H)
        "b": (params["b_ih"] + params["b_hh"]).reshape(1, 4 * H)
             .astype(jnp.float32),                                            # (1, 4H)
        "wfc_t": jnp.transpose(params["w_fc"], (1, 0)).astype(jnp.float32),   # (H, O)
        "bfc": params["b_fc"].reshape(1, O).astype(jnp.float32),              # (1, O)
    }


@jax.jit
def gesture_lstm_forward(x, prepared):
    """x: (B, T, F) float32, batch_first like the PyTorch module."""
    B, T, F = x.shape
    if T < 1:
        raise ValueError("GestureLSTM forward requires sequence length >= 1")
    H = prepared["whh_t"].shape[0]
    O = prepared["wfc_t"].shape[1]

    # Pad batch to a full sublane tile so per-step xp slices are tile-aligned.
    BP = max(SUBLANE, ((B + SUBLANE - 1) // SUBLANE) * SUBLANE)
    x_pad = jnp.pad(x, ((0, BP - B), (0, 0), (0, 0))) if BP != B else x

    # Layout plumbing only (fused under jit): time-major, flattened so the
    # input projection for every timestep is one well-shaped MXU matmul.
    x_tb_f = jnp.transpose(x_pad, (1, 0, 2)).reshape(T * BP, F)  # (T*BP, F)

    kernel = functools.partial(_gesture_lstm_kernel,
                               seq_len=T, batch_padded=BP, hidden_size=H)

    vmem_spec = lambda: pl.BlockSpec(memory_space=pltpu.MemorySpace.VMEM)

    out_padded = pl.pallas_call(
        kernel,
        out_shape=jax.ShapeDtypeStruct((BP, O), jnp.float32),
        # No grid: single invocation, every operand fully resident in VMEM.
        in_specs=[vmem_spec() for _ in range(6)],
        out_specs=vmem_spec(),
    )(x_tb_f, prepared["wih_t"], prepared["whh_t"], prepared["b"],
      prepared["wfc_t"], prepared["bfc"])

    return out_padded[:B]


def _reference_forward(x, params):
    """Pure-JAX f32 reference mirroring PyTorch nn.LSTM + nn.Linear semantics."""
    B, T, F = x.shape
    H = params["w_hh"].shape[1]
    h = jnp.zeros((B, H), jnp.float32)
    c = jnp.zeros((B, H), jnp.float32)
    wih_t = params["w_ih"].T
    whh_t = params["w_hh"].T
    b = params["b_ih"] + params["b_hh"]
    for t in range(T):
        g = x[:, t, :] @ wih_t + h @ whh_t + b
        i = jax.nn.sigmoid(g[:, 0 * H:1 * H])
        f = jax.nn.sigmoid(g[:, 1 * H:2 * H])
        gg = jnp.tanh(g[:, 2 * H:3 * H])
        o = jax.nn.sigmoid(g[:, 3 * H:4 * H])
        c = f * c + i * gg
        h = o * jnp.tanh(c)
    return h @ params["w_fc"].T + params["b_fc"]


def init_params(key, input_size=42, hidden_size=64, output_size=4):
    # PyTorch default init: U(-1/sqrt(H), 1/sqrt(H)) for LSTM and Linear here.
    ks = jax.random.split(key, 6)
    k = 1.0 / jnp.sqrt(hidden_size)
    return {
        "w_ih": jax.random.uniform(ks[0], (4 * hidden_size, input_size),
                                   jnp.float32, -k, k),
        "w_hh": jax.random.uniform(ks[1], (4 * hidden_size, hidden_size),
                                   jnp.float32, -k, k),
        "b_ih": jax.random.uniform(ks[2], (4 * hidden_size,), jnp.float32, -k, k),
        "b_hh": jax.random.uniform(ks[3], (4 * hidden_size,), jnp.float32, -k, k),
        "w_fc": jax.random.uniform(ks[4], (output_size, hidden_size),
                                   jnp.float32, -k, k),
        "b_fc": jax.random.uniform(ks[5], (output_size,), jnp.float32, -k, k),
    }


if __name__ == "__main__":
    key = jax.random.PRNGKey(0)
    k_x, k_p = jax.random.split(key)

    B, T, F = 2, 8, 42          # batch=2, seq=8, input_size=42
    params = init_params(k_p, input_size=F, hidden_size=64, output_size=4)
    prepared = prepare_params(params)   # one-time layout work
    x = jax.random.normal(k_x, (B, T, F), jnp.float32)

    out = gesture_lstm_forward(x, prepared)
    out = jax.block_until_ready(out)

    ref = _reference_forward(x, params)
    assert out.shape == (B, 4)
    # Tolerance relaxed vs. f32-only version: the recurrent matmul now runs
    # with bf16 operands (f32 accumulation) per the perf review.
    assert jnp.allclose(out, ref, atol=5e-3, rtol=5e-3)

    print("KERNEL_OK")
</pallas_src>

<mosaic_0001>
module attributes {stable_mosaic.version = 11 : i64} {
  func.func @_gesture_lstm_kernel(%arg0: memref<64x42xf32, #tpu.memory_space<vmem>>, %arg1: memref<42x256xf32, #tpu.memory_space<vmem>>, %arg2: memref<64x256xbf16, #tpu.memory_space<vmem>>, %arg3: memref<1x256xf32, #tpu.memory_space<vmem>>, %arg4: memref<64x4xf32, #tpu.memory_space<vmem>>, %arg5: memref<1x4xf32, #tpu.memory_space<vmem>>, %arg6: memref<8x4xf32, #tpu.memory_space<vmem>>) attributes {dimension_semantics = [], scalar_prefetch = 0 : i64, scratch_operands = 0 : i64, tpu.core_type = #tpu.core_type<tc>} {
    %c0 = arith.constant 0 : index
    %c0_0 = arith.constant 0 : index
    %0 = vector.load %arg0[%c0, %c0_0] : memref<64x42xf32, #tpu.memory_space<vmem>>, vector<64x42xf32>
    %c0_1 = arith.constant 0 : index
    %c0_2 = arith.constant 0 : index
    %1 = vector.load %arg1[%c0_1, %c0_2] : memref<42x256xf32, #tpu.memory_space<vmem>>, vector<42x256xf32>
    %cst = arith.constant dense<0.000000e+00> : vector<64x256xf32>
    %2 = tpu.matmul %0, %1, %cst {dimension_numbers = #tpu.dot_dimension_numbers<[1], [0], [0], [1], [0, 0, 1, 1], [], []>} : vector<64x42xf32>, vector<42x256xf32>, vector<64x256xf32> -> vector<64x256xf32>
    %c0_3 = arith.constant 0 : index
    %c0_4 = arith.constant 0 : index
    %3 = vector.load %arg3[%c0_3, %c0_4] : memref<1x256xf32, #tpu.memory_space<vmem>>, vector<1x256xf32>
    %4 = vector.broadcast %3 : vector<1x256xf32> to vector<64x256xf32>
    %5 = arith.addf %2, %4 : vector<64x256xf32>
    %c0_5 = arith.constant 0 : index
    %c0_6 = arith.constant 0 : index
    %6 = vector.load %arg2[%c0_5, %c0_6] : memref<64x256xbf16, #tpu.memory_space<vmem>>, vector<64x256xbf16>
    %7 = tpu.iota {dimensions = array<i32: 1>} : vector<8x128xi32>
    %c64_i32 = arith.constant 64 : i32
    %8 = vector.broadcast %c64_i32 : i32 to vector<8x128xi32>
    %9 = arith.cmpi slt, %7, %8 : vector<8x128xi32>
    %cst_7 = arith.constant 0.000000e+00 : f32
    %10 = vector.broadcast %cst_7 : f32 to vector<8x64xf32>
    %cst_8 = arith.constant 0.000000e+00 : f32
    %11 = vector.broadcast %cst_8 : f32 to vector<8x64xf32>
    %12 = arith.truncf %10 : vector<8x64xf32> to vector<8x64xbf16>
    %cst_9 = arith.constant dense<0.000000e+00> : vector<8x256xf32>
    %13 = tpu.matmul %12, %6, %cst_9 {dimension_numbers = #tpu.dot_dimension_numbers<[1], [0], [0], [1], [0, 0, 1, 1], [], []>} : vector<8x64xbf16>, vector<64x256xbf16>, vector<8x256xf32> -> vector<8x256xf32>
    %14 = vector.extract_strided_slice %5 {offsets = [0, 0], sizes = [8, 256], strides = [1, 1]} : vector<64x256xf32> to vector<8x256xf32>
    %15 = arith.addf %14, %13 : vector<8x256xf32>
    %16 = vector.extract_strided_slice %15 {offsets = [0, 0], sizes = [8, 128], strides = [1, 1]} : vector<8x256xf32> to vector<8x128xf32>
    %17 = vector.extract_strided_slice %15 {offsets = [0, 128], sizes = [8, 128], strides = [1, 1]} : vector<8x256xf32> to vector<8x128xf32>
    %18 = arith.negf %16 : vector<8x128xf32>
    %19 = math.exp %18 : vector<8x128xf32>
    %cst_10 = arith.constant 1.000000e+00 : f32
    %20 = vector.broadcast %cst_10 : f32 to vector<8x128xf32>
    %21 = arith.addf %20, %19 : vector<8x128xf32>
    %22 = arith.divf %20, %21 : vector<8x128xf32>
    %23 = math.tanh %17 : vector<8x128xf32>
    %24 = arith.negf %17 : vector<8x128xf32>
    %25 = math.exp %24 : vector<8x128xf32>
    %cst_11 = arith.constant 1.000000e+00 : f32
    %26 = vector.broadcast %cst_11 : f32 to vector<8x128xf32>
    %27 = arith.addf %26, %25 : vector<8x128xf32>
    %28 = arith.divf %26, %27 : vector<8x128xf32>
    %29 = arith.select %9, %23, %28 : vector<8x128xi1>, vector<8x128xf32>
    %30 = vector.extract_strided_slice %22 {offsets = [0, 0], sizes = [8, 64], strides = [1, 1]} : vector<8x128xf32> to vector<8x64xf32>
    %31 = vector.extract_strided_slice %22 {offsets = [0, 64], sizes = [8, 64], strides = [1, 1]} : vector<8x128xf32> to vector<8x64xf32>
    %32 = vector.extract_strided_slice %29 {offsets = [0, 0], sizes = [8, 64], strides = [1, 1]} : vector<8x128xf32> to vector<8x64xf32>
    %33 = vector.extract_strided_slice %29 {offsets = [0, 64], sizes = [8, 64], strides = [1, 1]} : vector<8x128xf32> to vector<8x64xf32>
    %34 = arith.mulf %31, %11 : vector<8x64xf32>
    %35 = arith.mulf %30, %32 : vector<8x64xf32>
    %36 = arith.addf %34, %35 : vector<8x64xf32>
    %37 = math.tanh %36 : vector<8x64xf32>
    %38 = arith.mulf %33, %37 : vector<8x64xf32>
    %39 = arith.truncf %38 : vector<8x64xf32> to vector<8x64xbf16>
    %cst_12 = arith.constant dense<0.000000e+00> : vector<8x256xf32>
    %40 = tpu.matmul %39, %6, %cst_12 {dimension_numbers = #tpu.dot_dimension_numbers<[1], [0], [0], [1], [0, 0, 1, 1], [], []>} : vector<8x64xbf16>, vector<64x256xbf16>, vector<8x256xf32> -> vector<8x256xf32>
    %41 = vector.extract_strided_slice %5 {offsets = [8, 0], sizes = [8, 256], strides = [1, 1]} : vector<64x256xf32> to vector<8x256xf32>
    %42 = arith.addf %41, %40 : vector<8x256xf32>
    %43 = vector.extract_strided_slice %42 {offsets = [0, 0], sizes = [8, 128], strides = [1, 1]} : vector<8x256xf32> to vector<8x128xf32>
    %44 = vector.extract_strided_slice %42 {offsets = [0, 128], sizes = [8, 128], strides = [1, 1]} : vector<8x256xf32> to vector<8x128xf32>
    %45 = arith.negf %43 : vector<8x128xf32>
    %46 = math.exp %45 : vector<8x128xf32>
    %cst_13 = arith.constant 1.000000e+00 : f32
    %47 = vector.broadcast %cst_13 : f32 to vector<8x128xf32>
    %48 = arith.addf %47, %46 : vector<8x128xf32>
    %49 = arith.divf %47, %48 : vector<8x128xf32>
    %50 = math.tanh %44 : vector<8x128xf32>
    %51 = arith.negf %44 : vector<8x128xf32>
    %52 = math.exp %51 : vector<8x128xf32>
    %cst_14 = arith.constant 1.000000e+00 : f32
    %53 = vector.broadcast %cst_14 : f32 to vector<8x128xf32>
    %54 = arith.addf %53, %52 : vector<8x128xf32>
    %55 = arith.divf %53, %54 : vector<8x128xf32>
    %56 = arith.select %9, %50, %55 : vector<8x128xi1>, vector<8x128xf32>
    %57 = vector.extract_strided_slice %49 {offsets = [0, 0], sizes = [8, 64], strides = [1, 1]} : vector<8x128xf32> to vector<8x64xf32>
    %58 = vector.extract_strided_slice %49 {offsets = [0, 64], sizes = [8, 64], strides = [1, 1]} : vector<8x128xf32> to vector<8x64xf32>
    %59 = vector.extract_strided_slice %56 {offsets = [0, 0], sizes = [8, 64], strides = [1, 1]} : vector<8x128xf32> to vector<8x64xf32>
    %60 = vector.extract_strided_slice %56 {offsets = [0, 64], sizes = [8, 64], strides = [1, 1]} : vector<8x128xf32> to vector<8x64xf32>
    %61 = arith.mulf %58, %36 : vector<8x64xf32>
    %62 = arith.mulf %57, %59 : vector<8x64xf32>
    %63 = arith.addf %61, %62 : vector<8x64xf32>
    %64 = math.tanh %63 : vector<8x64xf32>
    %65 = arith.mulf %60, %64 : vector<8x64xf32>
    %66 = arith.truncf %65 : vector<8x64xf32> to vector<8x64xbf16>
    %cst_15 = arith.constant dense<0.000000e+00> : vector<8x256xf32>
    %67 = tpu.matmul %66, %6, %cst_15 {dimension_numbers = #tpu.dot_dimension_numbers<[1], [0], [0], [1], [0, 0, 1, 1], [], []>} : vector<8x64xbf16>, vector<64x256xbf16>, vector<8x256xf32> -> vector<8x256xf32>
    %68 = vector.extract_strided_slice %5 {offsets = [16, 0], sizes = [8, 256], strides = [1, 1]} : vector<64x256xf32> to vector<8x256xf32>
    %69 = arith.addf %68, %67 : vector<8x256xf32>
    %70 = vector.extract_strided_slice %69 {offsets = [0, 0], sizes = [8, 128], strides = [1, 1]} : vector<8x256xf32> to vector<8x128xf32>
    %71 = vector.extract_strided_slice %69 {offsets = [0, 128], sizes = [8, 128], strides = [1, 1]} : vector<8x256xf32> to vector<8x128xf32>
    %72 = arith.negf %70 : vector<8x128xf32>
    %73 = math.exp %72 : vector<8x128xf32>
    %cst_16 = arith.constant 1.000000e+00 : f32
    %74 = vector.broadcast %cst_16 : f32 to vector<8x128xf32>
    %75 = arith.addf %74, %73 : vector<8x128xf32>
    %76 = arith.divf %74, %75 : vector<8x128xf32>
    %77 = math.tanh %71 : vector<8x128xf32>
    %78 = arith.negf %71 : vector<8x128xf32>
    %79 = math.exp %78 : vector<8x128xf32>
    %cst_17 = arith.constant 1.000000e+00 : f32
    %80 = vector.broadcast %cst_17 : f32 to vector<8x128xf32>
    %81 = arith.addf %80, %79 : vector<8x128xf32>
    %82 = arith.divf %80, %81 : vector<8x128xf32>
    %83 = arith.select %9, %77, %82 : vector<8x128xi1>, vector<8x128xf32>
    %84 = vector.extract_strided_slice %76 {offsets = [0, 0], sizes = [8, 64], strides = [1, 1]} : vector<8x128xf32> to vector<8x64xf32>
    %85 = vector.extract_strided_slice %76 {offsets = [0, 64], sizes = [8, 64], strides = [1, 1]} : vector<8x128xf32> to vector<8x64xf32>
    %86 = vector.extract_strided_slice %83 {offsets = [0, 0], sizes = [8, 64], strides = [1, 1]} : vector<8x128xf32> to vector<8x64xf32>
    %87 = vector.extract_strided_slice %83 {offsets = [0, 64], sizes = [8, 64], strides = [1, 1]} : vector<8x128xf32> to vector<8x64xf32>
    %88 = arith.mulf %85, %63 : vector<8x64xf32>
    %89 = arith.mulf %84, %86 : vector<8x64xf32>
    %90 = arith.addf %88, %89 : vector<8x64xf32>
    %91 = math.tanh %90 : vector<8x64xf32>
    %92 = arith.mulf %87, %91 : vector<8x64xf32>
    %93 = arith.truncf %92 : vector<8x64xf32> to vector<8x64xbf16>
    %cst_18 = arith.constant dense<0.000000e+00> : vector<8x256xf32>
    %94 = tpu.matmul %93, %6, %cst_18 {dimension_numbers = #tpu.dot_dimension_numbers<[1], [0], [0], [1], [0, 0, 1, 1], [], []>} : vector<8x64xbf16>, vector<64x256xbf16>, vector<8x256xf32> -> vector<8x256xf32>
    %95 = vector.extract_strided_slice %5 {offsets = [24, 0], sizes = [8, 256], strides = [1, 1]} : vector<64x256xf32> to vector<8x256xf32>
    %96 = arith.addf %95, %94 : vector<8x256xf32>
    %97 = vector.extract_strided_slice %96 {offsets = [0, 0], sizes = [8, 128], strides = [1, 1]} : vector<8x256xf32> to vector<8x128xf32>
    %98 = vector.extract_strided_slice %96 {offsets = [0, 128], sizes = [8, 128], strides = [1, 1]} : vector<8x256xf32> to vector<8x128xf32>
    %99 = arith.negf %97 : vector<8x128xf32>
    %100 = math.exp %99 : vector<8x128xf32>
    %cst_19 = arith.constant 1.000000e+00 : f32
    %101 = vector.broadcast %cst_19 : f32 to vector<8x128xf32>
    %102 = arith.addf %101, %100 : vector<8x128xf32>
    %103 = arith.divf %101, %102 : vector<8x128xf32>
    %104 = math.tanh %98 : vector<8x128xf32>
    %105 = arith.negf %98 : vector<8x128xf32>
    %106 = math.exp %105 : vector<8x128xf32>
    %cst_20 = arith.constant 1.000000e+00 : f32
    %107 = vector.broadcast %cst_20 : f32 to vector<8x128xf32>
    %108 = arith.addf %107, %106 : vector<8x128xf32>
    %109 = arith.divf %107, %108 : vector<8x128xf32>
    %110 = arith.select %9, %104, %109 : vector<8x128xi1>, vector<8x128xf32>
    %111 = vector.extract_strided_slice %103 {offsets = [0, 0], sizes = [8, 64], strides = [1, 1]} : vector<8x128xf32> to vector<8x64xf32>
    %112 = vector.extract_strided_slice %103 {offsets = [0, 64], sizes = [8, 64], strides = [1, 1]} : vector<8x128xf32> to vector<8x64xf32>
    %113 = vector.extract_strided_slice %110 {offsets = [0, 0], sizes = [8, 64], strides = [1, 1]} : vector<8x128xf32> to vector<8x64xf32>
    %114 = vector.extract_strided_slice %110 {offsets = [0, 64], sizes = [8, 64], strides = [1, 1]} : vector<8x128xf32> to vector<8x64xf32>
    %115 = arith.mulf %112, %90 : vector<8x64xf32>
    %116 = arith.mulf %111, %113 : vector<8x64xf32>
    %117 = arith.addf %115, %116 : vector<8x64xf32>
    %118 = math.tanh %117 : vector<8x64xf32>
    %119 = arith.mulf %114, %118 : vector<8x64xf32>
    %120 = arith.truncf %119 : vector<8x64xf32> to vector<8x64xbf16>
    %cst_21 = arith.constant dense<0.000000e+00> : vector<8x256xf32>
    %121 = tpu.matmul %120, %6, %cst_21 {dimension_numbers = #tpu.dot_dimension_numbers<[1], [0], [0], [1], [0, 0, 1, 1], [], []>} : vector<8x64xbf16>, vector<64x256xbf16>, vector<8x256xf32> -> vector<8x256xf32>
    %122 = vector.extract_strided_slice %5 {offsets = [32, 0], sizes = [8, 256], strides = [1, 1]} : vector<64x256xf32> to vector<8x256xf32>
    %123 = arith.addf %122, %121 : vector<8x256xf32>
    %124 = vector.extract_strided_slice %123 {offsets = [0, 0], sizes = [8, 128], strides = [1, 1]} : vector<8x256xf32> to vector<8x128xf32>
    %125 = vector.extract_strided_slice %123 {offsets = [0, 128], sizes = [8, 128], strides = [1, 1]} : vector<8x256xf32> to vector<8x128xf32>
    %126 = arith.negf %124 : vector<8x128xf32>
    %127 = math.exp %126 : vector<8x128xf32>
    %cst_22 = arith.constant 1.000000e+00 : f32
    %128 = vector.broadcast %cst_22 : f32 to vector<8x128xf32>
    %129 = arith.addf %128, %127 : vector<8x128xf32>
    %130 = arith.divf %128, %129 : vector<8x128xf32>
    %131 = math.tanh %125 : vector<8x128xf32>
    %132 = arith.negf %125 : vector<8x128xf32>
    %133 = math.exp %132 : vector<8x128xf32>
    %cst_23 = arith.constant 1.000000e+00 : f32
    %134 = vector.broadcast %cst_23 : f32 to vector<8x128xf32>
    %135 = arith.addf %134, %133 : vector<8x128xf32>
    %136 = arith.divf %134, %135 : vector<8x128xf32>
    %137 = arith.select %9, %131, %136 : vector<8x128xi1>, vector<8x128xf32>
    %138 = vector.extract_strided_slice %130 {offsets = [0, 0], sizes = [8, 64], strides = [1, 1]} : vector<8x128xf32> to vector<8x64xf32>
    %139 = vector.extract_strided_slice %130 {offsets = [0, 64], sizes = [8, 64], strides = [1, 1]} : vector<8x128xf32> to vector<8x64xf32>
    %140 = vector.extract_strided_slice %137 {offsets = [0, 0], sizes = [8, 64], strides = [1, 1]} : vector<8x128xf32> to vector<8x64xf32>
    %141 = vector.extract_strided_slice %137 {offsets = [0, 64], sizes = [8, 64], strides = [1, 1]} : vector<8x128xf32> to vector<8x64xf32>
    %142 = arith.mulf %139, %117 : vector<8x64xf32>
    %143 = arith.mulf %138, %140 : vector<8x64xf32>
    %144 = arith.addf %142, %143 : vector<8x64xf32>
    %145 = math.tanh %144 : vector<8x64xf32>
    %146 = arith.mulf %141, %145 : vector<8x64xf32>
    %147 = arith.truncf %146 : vector<8x64xf32> to vector<8x64xbf16>
    %cst_24 = arith.constant dense<0.000000e+00> : vector<8x256xf32>
    %148 = tpu.matmul %147, %6, %cst_24 {dimension_numbers = #tpu.dot_dimension_numbers<[1], [0], [0], [1], [0, 0, 1, 1], [], []>} : vector<8x64xbf16>, vector<64x256xbf16>, vector<8x256xf32> -> vector<8x256xf32>
    %149 = vector.extract_strided_slice %5 {offsets = [40, 0], sizes = [8, 256], strides = [1, 1]} : vector<64x256xf32> to vector<8x256xf32>
    %150 = arith.addf %149, %148 : vector<8x256xf32>
    %151 = vector.extract_strided_slice %150 {offsets = [0, 0], sizes = [8, 128], strides = [1, 1]} : vector<8x256xf32> to vector<8x128xf32>
    %152 = vector.extract_strided_slice %150 {offsets = [0, 128], sizes = [8, 128], strides = [1, 1]} : vector<8x256xf32> to vector<8x128xf32>
    %153 = arith.negf %151 : vector<8x128xf32>
    %154 = math.exp %153 : vector<8x128xf32>
    %cst_25 = arith.constant 1.000000e+00 : f32
    %155 = vector.broadcast %cst_25 : f32 to vector<8x128xf32>
    %156 = arith.addf %155, %154 : vector<8x128xf32>
    %157 = arith.divf %155, %156 : vector<8x128xf32>
    %158 = math.tanh %152 : vector<8x128xf32>
    %159 = arith.negf %152 : vector<8x128xf32>
    %160 = math.exp %159 : vector<8x128xf32>
    %cst_26 = arith.constant 1.000000e+00 : f32
    %161 = vector.broadcast %cst_26 : f32 to vector<8x128xf32>
    %162 = arith.addf %161, %160 : vector<8x128xf32>
    %163 = arith.divf %161, %162 : vector<8x128xf32>
    %164 = arith.select %9, %158, %163 : vector<8x128xi1>, vector<8x128xf32>
    %165 = vector.extract_strided_slice %157 {offsets = [0, 0], sizes = [8, 64], strides = [1, 1]} : vector<8x128xf32> to vector<8x64xf32>
    %166 = vector.extract_strided_slice %157 {offsets = [0, 64], sizes = [8, 64], strides = [1, 1]} : vector<8x128xf32> to vector<8x64xf32>
    %167 = vector.extract_strided_slice %164 {offsets = [0, 0], sizes = [8, 64], strides = [1, 1]} : vector<8x128xf32> to vector<8x64xf32>
    %168 = vector.extract_strided_slice %164 {offsets = [0, 64], sizes = [8, 64], strides = [1, 1]} : vector<8x128xf32> to vector<8x64xf32>
    %169 = arith.mulf %166, %144 : vector<8x64xf32>
    %170 = arith.mulf %165, %167 : vector<8x64xf32>
    %171 = arith.addf %169, %170 : vector<8x64xf32>
    %172 = math.tanh %171 : vector<8x64xf32>
    %173 = arith.mulf %168, %172 : vector<8x64xf32>
    %174 = arith.truncf %173 : vector<8x64xf32> to vector<8x64xbf16>
    %cst_27 = arith.constant dense<0.000000e+00> : vector<8x256xf32>
    %175 = tpu.matmul %174, %6, %cst_27 {dimension_numbers = #tpu.dot_dimension_numbers<[1], [0], [0], [1], [0, 0, 1, 1], [], []>} : vector<8x64xbf16>, vector<64x256xbf16>, vector<8x256xf32> -> vector<8x256xf32>
    %176 = vector.extract_strided_slice %5 {offsets = [48, 0], sizes = [8, 256], strides = [1, 1]} : vector<64x256xf32> to vector<8x256xf32>
    %177 = arith.addf %176, %175 : vector<8x256xf32>
    %178 = vector.extract_strided_slice %177 {offsets = [0, 0], sizes = [8, 128], strides = [1, 1]} : vector<8x256xf32> to vector<8x128xf32>
    %179 = vector.extract_strided_slice %177 {offsets = [0, 128], sizes = [8, 128], strides = [1, 1]} : vector<8x256xf32> to vector<8x128xf32>
    %180 = arith.negf %178 : vector<8x128xf32>
    %181 = math.exp %180 : vector<8x128xf32>
    %cst_28 = arith.constant 1.000000e+00 : f32
    %182 = vector.broadcast %cst_28 : f32 to vector<8x128xf32>
    %183 = arith.addf %182, %181 : vector<8x128xf32>
    %184 = arith.divf %182, %183 : vector<8x128xf32>
    %185 = math.tanh %179 : vector<8x128xf32>
    %186 = arith.negf %179 : vector<8x128xf32>
    %187 = math.exp %186 : vector<8x128xf32>
    %cst_29 = arith.constant 1.000000e+00 : f32
    %188 = vector.broadcast %cst_29 : f32 to vector<8x128xf32>
    %189 = arith.addf %188, %187 : vector<8x128xf32>
    %190 = arith.divf %188, %189 : vector<8x128xf32>
    %191 = arith.select %9, %185, %190 : vector<8x128xi1>, vector<8x128xf32>
    %192 = vector.extract_strided_slice %184 {offsets = [0, 0], sizes = [8, 64], strides = [1, 1]} : vector<8x128xf32> to vector<8x64xf32>
    %193 = vector.extract_strided_slice %184 {offsets = [0, 64], sizes = [8, 64], strides = [1, 1]} : vector<8x128xf32> to vector<8x64xf32>
    %194 = vector.extract_strided_slice %191 {offsets = [0, 0], sizes = [8, 64], strides = [1, 1]} : vector<8x128xf32> to vector<8x64xf32>
    %195 = vector.extract_strided_slice %191 {offsets = [0, 64], sizes = [8, 64], strides = [1, 1]} : vector<8x128xf32> to vector<8x64xf32>
    %196 = arith.mulf %193, %171 : vector<8x64xf32>
    %197 = arith.mulf %192, %194 : vector<8x64xf32>
    %198 = arith.addf %196, %197 : vector<8x64xf32>
    %199 = math.tanh %198 : vector<8x64xf32>
    %200 = arith.mulf %195, %199 : vector<8x64xf32>
    %201 = arith.truncf %200 : vector<8x64xf32> to vector<8x64xbf16>
    %cst_30 = arith.constant dense<0.000000e+00> : vector<8x256xf32>
    %202 = tpu.matmul %201, %6, %cst_30 {dimension_numbers = #tpu.dot_dimension_numbers<[1], [0], [0], [1], [0, 0, 1, 1], [], []>} : vector<8x64xbf16>, vector<64x256xbf16>, vector<8x256xf32> -> vector<8x256xf32>
    %203 = vector.extract_strided_slice %5 {offsets = [56, 0], sizes = [8, 256], strides = [1, 1]} : vector<64x256xf32> to vector<8x256xf32>
    %204 = arith.addf %203, %202 : vector<8x256xf32>
    %205 = vector.extract_strided_slice %204 {offsets = [0, 0], sizes = [8, 128], strides = [1, 1]} : vector<8x256xf32> to vector<8x128xf32>
    %206 = vector.extract_strided_slice %204 {offsets = [0, 128], sizes = [8, 128], strides = [1, 1]} : vector<8x256xf32> to vector<8x128xf32>
    %207 = arith.negf %205 : vector<8x128xf32>
    %208 = math.exp %207 : vector<8x128xf32>
    %cst_31 = arith.constant 1.000000e+00 : f32
    %209 = vector.broadcast %cst_31 : f32 to vector<8x128xf32>
    %210 = arith.addf %209, %208 : vector<8x128xf32>
    %211 = arith.divf %209, %210 : vector<8x128xf32>
    %212 = math.tanh %206 : vector<8x128xf32>
    %213 = arith.negf %206 : vector<8x128xf32>
    %214 = math.exp %213 : vector<8x128xf32>
    %cst_32 = arith.constant 1.000000e+00 : f32
    %215 = vector.broadcast %cst_32 : f32 to vector<8x128xf32>
    %216 = arith.addf %215, %214 : vector<8x128xf32>
    %217 = arith.divf %215, %216 : vector<8x128xf32>
    %218 = arith.select %9, %212, %217 : vector<8x128xi1>, vector<8x128xf32>
    %219 = vector.extract_strided_slice %211 {offsets = [0, 0], sizes = [8, 64], strides = [1, 1]} : vector<8x128xf32> to vector<8x64xf32>
    %220 = vector.extract_strided_slice %211 {offsets = [0, 64], sizes = [8, 64], strides = [1, 1]} : vector<8x128xf32> to vector<8x64xf32>
    %221 = vector.extract_strided_slice %218 {offsets = [0, 0], sizes = [8, 64], strides = [1, 1]} : vector<8x128xf32> to vector<8x64xf32>
    %222 = vector.extract_strided_slice %218 {offsets = [0, 64], sizes = [8, 64], strides = [1, 1]} : vector<8x128xf32> to vector<8x64xf32>
    %223 = arith.mulf %220, %198 : vector<8x64xf32>
    %224 = arith.mulf %219, %221 : vector<8x64xf32>
    %225 = arith.addf %223, %224 : vector<8x64xf32>
    %226 = math.tanh %225 : vector<8x64xf32>
    %227 = arith.mulf %222, %226 : vector<8x64xf32>
    %c0_33 = arith.constant 0 : index
    %c0_34 = arith.constant 0 : index
    %228 = vector.load %arg4[%c0_33, %c0_34] : memref<64x4xf32, #tpu.memory_space<vmem>>, vector<64x4xf32>
    %cst_35 = arith.constant dense<0.000000e+00> : vector<8x4xf32>
    %229 = tpu.matmul %227, %228, %cst_35 {dimension_numbers = #tpu.dot_dimension_numbers<[1], [0], [0], [1], [0, 0, 1, 1], [], []>} : vector<8x64xf32>, vector<64x4xf32>, vector<8x4xf32> -> vector<8x4xf32>
    %c0_36 = arith.constant 0 : index
    %c0_37 = arith.constant 0 : index
    %230 = vector.load %arg5[%c0_36, %c0_37] : memref<1x4xf32, #tpu.memory_space<vmem>>, vector<1x4xf32>
    %231 = vector.broadcast %230 : vector<1x4xf32> to vector<8x4xf32>
    %232 = arith.addf %229, %231 : vector<8x4xf32>
    %c0_38 = arith.constant 0 : index
    %c0_39 = arith.constant 0 : index
    %233 = vector.load %arg6[%c0_38, %c0_39] : memref<8x4xf32, #tpu.memory_space<vmem>>, vector<8x4xf32>
    tpu.vector_store %arg6[%c0_38, %c0_39], %232 {strides = array<i32>} : memref<8x4xf32, #tpu.memory_space<vmem>>, vector<8x4xf32>,
    return
  }
}

</mosaic_0001>

<bundles_post_ra>
// kernel: gesture_lstm_forward.1
= control target key start
LH: loop header
LB: loop body
LE: loop exit
PB: predicated region body
PF: predicated region fallthrough
CT: control target
= control target key end

     0   :  { %v1140_v1 = vmov 0.0   ;;  %v1141_v5 = vmov 0   ;;  %vm81_vm0 = vcmask 1041408   ;;  %vm1142_vm1 = vmmov 1   ;;  %s1501_s2 = inlined_call_operand.vmem [shape: bf16[64,256], index: 2, kind: input, shape index: {}]   ;;  %s1502_s1 = inlined_call_operand.vmem [shape: f32[42,256], index: 1, kind: input, shape index: {}]   ;;  %s1503_s0 = inlined_call_operand.vmem [shape: f32[64,42], index: 0, kind: input, shape index: {}]   ;;  %s1504_s3 = inlined_call_operand.vmem [shape: f32[1,256], index: 3, kind: input, shape index: {}]   ;;  %s1505_s4 = inlined_call_operand.vmem [shape: f32[64,4], index: 4, kind: input, shape index: {}]   ;;  %s1506_s5 = inlined_call_operand.vmem [shape: f32[1,4], index: 5, kind: input, shape index: {}]   ;;  %s1507_s6 = inlined_call_operand.vmem [shape: f32[8,4], index: 6, kind: output, shape index: {}]  }
   0x1   :  { %v1184_v0 = vld [vmem:[%s1501_s2 + $0x4] ss:$8 sps:$4 sm:$0xff]   ;;  %152 = vmatprep.mubr.f32.mxu0 %v1140_v1  ;;  %v35_v3 = vld [vmem:[%s1502_s1 + $0x18] sm:$0xff]  ;;  %v1196_v4 = vld [vmem:[%s1501_s2] ss:$8 sps:$4 sm:$0xff]   ;;  %288 = vmatprep.mubr.bf16.mxu1 %v1141_v5  ;;  %vm56_vm3 = vcmask 343040   ;;  %v46_v29 = vlaneseq }
   0x2   :  { %v33_v2 = vld [vmem:[%s1502_s1 + $0x8] sm:$0xff]  ;;  %256 = vmatprep.subr.bf16.mxu1 %v1184_v0  ;;  %v32_v7 = vld [vmem:[%s1502_s1] sm:$0xff]  ;;  %v34_v8 = vld [vmem:[%s1502_s1 + $0x10] sm:$0xff]  ;;  %vm252_vm5 = vcmask 523264   ;;  %vm1145_vm6 = vmmov 0   ;;  %vm923_vm7 = vcmask 31744  }
   0x3   :  { %v1000_v6 = vpack.c.bf16 %v35_v3, %v33_v2  ;;  %257 = vmatpush1.bf16.msra.mxu1 %v1196_v4  ;;  %v1002_v9 = vpack.c.bf16 %v34_v8, %v32_v7  ;;  %v1210_v10 = vld [vmem:[%s1501_s2 + $0x14] ss:$8 sps:$4 sm:$0xff]   ;;  %v37_v11 = vld [vmem:[%s1502_s1 + $0x28] sm:$0xff]  ;;  %v1221_v13 = vld [vmem:[%s1501_s2 + $0x10] ss:$8 sps:$4 sm:$0xff]   ;;  %v47_v30 = vshrl.u32 %v46_v29, 7 }
   0x4   :  { %v39_v12 = vld [vmem:[%s1502_s1 + $0x38] sm:$0xff]  ;;  %v36_v14 = vld [vmem:[%s1502_s1 + $0x20] sm:$0xff]  ;;  %258 = vmatprep.subr.bf16.mxu1 %v1210_v10  ;;  %v38_v16 = vld [vmem:[%s1502_s1 + $0x30] sm:$0xff]  ;;  %v1301_v52 = vand.u32 127, %v46_v29 }
   0x5   :  { %1001 = vmatprep.subr.bf16.mxu0 %v1000_v6  ;;  %v1004_v15 = vpack.c.bf16 %v39_v12, %v37_v11  ;;  %v1006_v17 = vpack.c.bf16 %v38_v16, %v36_v14  ;;  %v1233_v18 = vld [vmem:[%s1501_s2 + $0x24] ss:$8 sps:$4 sm:$0xff]   ;;  %v43_v20 = vld [vmem:[%s1502_s1 + $0x58] sm:$0x3]  ;;  %vm1009_vm2 = vmpackc.low %vm81_vm0, %vm1142_vm1  ;;  %v48_v31 = vsub.s32 0, %v47_v30  ;;  %v52_v33 = vsub.s32 1, %v47_v30 }
   0x6   :  { %1003 = vmatpush1.bf16.msra.mxu0 %v1002_v9  ;;  %v41_v19 = vld [vmem:[%s1502_s1 + $0x48] sm:$0xff]  ;;  %v40_v23 = vld [vmem:[%s1502_s1 + $0x40] sm:$0xff]  ;;  %v42_v24 = vld [vmem:[%s1502_s1 + $0x50] sm:$0x3]  ;;  %vm211_vm4 = vcmp.lt.s32.totalorder %v1301_v52, 64 }
   0x7   :  { %1005 = vmatprep.subr.bf16.mxu0 %v1004_v15  ;;  %259 = vmatpush1.bf16.msra.mxu1 %v1221_v13  ;;  %v1008_v21 = vpack.c.bf16 %v43_v20, %v41_v19  ;;  %v1245_v22 = vld [vmem:[%s1501_s2 + $0x20] ss:$8 sps:$4 sm:$0xff]   ;;  %v1011_v25 = vpack.c.bf16 %v42_v24, %v40_v23  ;;  %v1257_v26 = vld [vmem:[%s1501_s2 + $0x34] ss:$8 sps:$4 sm:$0xff]   ;;  %v1263_v27 = vld [vmem:[%s1501_s2 + $0x30] ss:$8 sps:$4 sm:$0xff]  }
   0x8   :  { %260 = vmatprep.subr.bf16.mxu1 %v1233_v18  ;;  %v24_v28 = vld [vmem:[%s1503_s0] sm:$0xff]  ;;  %v25_v58 = vld [vmem:[%s1503_s0 + $0x8] sm:$0xff] }
   0x9   :  { %v44_v32 = vld [vmem:[%s1504_s3] sm:$0x3]  ;;  %s1143_s3 = smov 64  }
   0xa   :  { %1007 = vmatpush1.bf16.msra.mxu0 %v1006_v17  ;;  %v1295_v34 = vrot.slane %v44_v32, %v48_v31  ;;  %v1297_v35 = vrot.slane %v44_v32, %v52_v33  ;;  %v26_v33 = vld [vmem:[%s1503_s0 + $0x10] sm:$0xff] }
   0xb   :  { %1010 = vmatprep.subr.msk.bf16.mxu0 %vm1009_vm2, %v1008_v21  ;;  %261 = vmatpush1.bf16.msra.mxu1 %v1245_v22 }
   0xc   :  { %262 = vmatprep.subr.bf16.mxu1 %v1257_v26 }
   0xe   :  { %1013 = vmatpush1.bf16.msk.msra.mxu0 %vm1009_vm2, %v1011_v25 }
   0xf   :  { %402 = vmatprep.subr.bf16.mxu0 %v1184_v0  ;;  %263 = vmatpush1.bf16.msra.mxu1 %v1263_v27 }
  0x10   :  { %329 = vmatprep.subr.bf16.mxu1 %v1184_v0 }
  0x11   :  { %931 = vmatmul.mubr.msk.f32.vlgmr.msra.gmra.mrb[0].mxu0 %vm56_vm3, %v24_v28 }
  0x12   :  { %158 = vmatprep.mubr.f32.mxu0 %v1140_v1  ;;  %403 = vmatpush1.bf16.msra.mxu0 %v1196_v4 }
  0x13   :  { %289 = vmatmul.mubr.bf16.vlgmr.msra.gmra.mrb[0].mxu1 %v1141_v5  ;;  %404 = vmatprep.subr.bf16.mxu0 %v1210_v10 }
  0x14   :  { %330 = vmatpush1.bf16.msra.mxu1 %v1196_v4  ;;  %361 = vmatprep.mubr.bf16.mxu1 %v1141_v5 }
  0x15   :  { %331 = vmatprep.subr.bf16.mxu1 %v1210_v10  ;;  %932 = vmatmul.mubr.msk.f32.gmra.mrb[2].mxu0 %vm56_vm3, %v25_v58 }
  0x16   :  { %405 = vmatpush1.bf16.msra.mxu0 %v1221_v13  ;;  %164 = vmatprep.mubr.f32.mxu0 %v1140_v1 }
  0x17   :  { %406 = vmatprep.subr.bf16.mxu0 %v1233_v18 }
  0x18   :  { %332 = vmatpush1.bf16.msra.mxu1 %v1221_v13 }
  0x19   :  { %333 = vmatprep.subr.bf16.mxu1 %v1233_v18  ;;  %933 = vmatmul.mubr.msk.f32.gmra.mrb[4].mxu0 %vm56_vm3, %v26_v33 }
  0x1a   :  { %407 = vmatpush1.bf16.msra.mxu0 %v1245_v22  ;;  %170 = vmatprep.mubr.f32.mxu0 %v1140_v1 }
  0x1b   :  { %408 = vmatprep.subr.bf16.mxu0 %v1257_v26 }
  0x1c   :  { %334 = vmatpush1.bf16.msra.mxu1 %v1245_v22 }
  0x1d   :  { %335 = vmatprep.subr.bf16.mxu1 %v1257_v26 }
  0x1e   :  { %409 = vmatpush1.bf16.msra.mxu0 %v1263_v27 }
  0x1f   :  { %548 = vmatprep.subr.bf16.mxu0 %v1184_v0 }
  0x20   :  { %336 = vmatpush1.bf16.msra.mxu1 %v1263_v27 }
  0x21   :  { %475 = vmatprep.subr.bf16.mxu1 %v1184_v0 }
  0xe4   :  { %v154_v36 = vpop.f32.mrb[0].mxu0 }
  0xe5   :  { %v155_v37 = vadd.f32 %v154_v36, %v1295_v34  ;;  %v156_v38 = vpop.f32.mrb[1].mxu0  ;;  %v27_v36 = vld [vmem:[%s1503_s0 + $0x18] sm:$0xff] }
  0xe6   :  { %v157_v39 = vadd.f32 %v156_v38, %v1297_v35  ;;  %v290_v40 = vpop.f32.mrb[0].mxu1  ;;  %934 = vmatmul.mubr.msk.f32.gmra.mrb[6].mxu0 %vm56_vm3, %v27_v36  ;;  %v29_v38 = vld [vmem:[%s1503_s0 + $0x28] sm:$0xff] }
  0xe7   :  { %v297_v41 = vadd.f32 %v290_v40, %v155_v37  ;;  %v292_v42 = vpop.f32.mrb[1].mxu1  ;;  %176 = vmatprep.mubr.f32.mxu0 %v1140_v1  ;;  %v28_v37 = vld [vmem:[%s1503_s0 + $0x20] sm:$0xff]  ;;  %v31_v40 = vld [vmem:[%s1503_s0 + $0x38] sm:$0xff] }
  0xe8   :  { %v298_v43 = vadd.f32 %v292_v42, %v157_v39  ;;  %v294_v44 = vpop.f32.mrb[2].mxu1  ;;  %v160_v3 = vpop.f32.mrb[2].mxu0  ;;  %v30_v39 = vld [vmem:[%s1503_s0 + $0x30] sm:$0xff] }
  0xe9   :  { %v947_v45 = vmul.f32 -1.442695, %v297_v41  ;;  %v295_v46 = vpop.f32.mrb[3].mxu1  ;;  %v162_v6 = vpop.f32.mrb[3].mxu0  ;;  %v161_v8 = vadd.f32 %v160_v3, %v1295_v34 }
  0xea   :  { %v948_v47 = vmul.f32 -1.442695, %v298_v43  ;;  %v163_v9 = vadd.f32 %v162_v6, %v1297_v35  ;;  %935 = vmatmul.mubr.msk.f32.gmra.mrb[8].mxu0 %vm56_vm3, %v28_v37 }
  0xeb   :  { %1044 = vpow2.f32 %v947_v45  ;;  %182 = vmatprep.mubr.f32.mxu0 %v1140_v1 }
  0xec   :  { %1046 = vpow2.f32 %v948_v47  ;;  %v166_v47 = vpop.f32.mrb[4].mxu0 }
  0xed   :  { %1048 = vtanh.f32 %v298_v43 }
  0xee   :  { %936 = vmatmul.mubr.msk.f32.gmra.mrb[10].mxu0 %vm56_vm3, %v29_v38 }
  0xef   :  { %188 = vmatprep.mubr.f32.mxu0 %v1140_v1 }
  0xf2   :  { %937 = vmatmul.mubr.msk.f32.gmra.mrb[12].mxu0 %vm56_vm3, %v30_v39 }
  0xf3   :  { %194 = vmatprep.mubr.f32.mxu0 %v1140_v1 }
  0xf5   :  { %v1045_v48 = vpop.eup %1044 }
  0xf6   :  { %v1047_v49 = vpop.eup %1046  ;;  %v302_v50 = vadd.f32 1.0, %v1045_v48  ;;  %938 = vmatmul.mubr.msk.f32.gmra.mrb[14].mxu0 %vm56_vm3, %v31_v40  ;;  %v168_v48 = vpop.f32.mrb[5].mxu0 }
  0xf7   :  { %v309_v51 = vadd.f32 1.0, %v1047_v49  ;;  %v1049_v53 = vpop.eup %1048  ;;  %434 = vmatprep.mubr.bf16.mxu0 %v1141_v5 }
  0xf9   :  { %1050 = vrcp.f32 %v309_v51 }
  0xfa   :  { %1052 = vrcp.f32 %v302_v50 }
 0x103   :  { %v1051_v54 = vpop.eup %1050 }
 0x104   :  { %v1053_v55 = vpop.eup %1052  ;;  %v312_v56 = vsel %vm211_vm4, %v1049_v53, %v1051_v54 }
 0x105   :  { %v314_v57 = vmul.f32 %v1053_v55, %v312_v56  ;;  %v313_v59 = vmul.f32 0.0, %v1053_v55 }
 0x107   :  { %316 = vrot.lane.b32.xlu0 %v314_v57, %s1143_s3 }
 0x179   :  { %v317_v60 = vpop.permute.xlu0 %316 }
 0x17a   :  { %v1312_v61 = vadd.f32 %v317_v60, %v313_v59 }
 0x17c   :  { %1054 = vtanh.f32 %v1312_v61 }
 0x186   :  { %v1055_v62 = vpop.eup %1054 }
 0x187   :  { %v321_v63 = vmul.f32 %v1055_v62, %v312_v56  ;;  %v169_v62 = vadd.f32 %v168_v48, %v1297_v35 }
 0x189   :  { %v322_v2 = vpack.c.bf16 %v321_v63, %v321_v63 }
 0x18b   :  { %324 = vrot.lane.b32.xlu0 %v322_v2, %s1143_s3 }
 0x1b9   :  { %v1363_v49 = vpop.f32.mrb[6].mxu0 }
 0x1ba   :  { %v1365_v50 = vpop.f32.mrb[7].mxu0  ;;  %v173_v33 = vadd.f32 %v1363_v49, %v1295_v34 }
 0x1bb   :  { %v175_v36 = vadd.f32 %v1365_v50, %v1297_v35 }
 0x1bd   :  { %v1367_v51 = vpop.f32.mrb[8].mxu0 }
 0x1be   :  { %v1369_v53 = vpop.f32.mrb[9].mxu0 }
 0x1c1   :  { %v1371_v54 = vpop.f32.mrb[10].mxu0 }
 0x1c2   :  { %v1373_v55 = vpop.f32.mrb[11].mxu0 }
 0x1c5   :  { %v1375_v56 = vpop.f32.mrb[12].mxu0 }
 0x1c6   :  { %v1377_v57 = vpop.f32.mrb[13].mxu0 }
 0x1c9   :  { %v1379_v58 = vpop.f32.mrb[14].mxu0 }
 0x1ca   :  { %v1381_v59 = vpop.f32.mrb[15].mxu0 }
 0x1fd   :  { %v325_v7 = vpop.permute.xlu0 %324 }
 0x1fe   :  { %949 = vmatmul.mubr.msk.bf16.vlgmr.msra.gmra.mrb[4].mxu1 %vm252_vm5, %v325_v7 }
 0x1ff   :  { %476 = vmatpush1.bf16.msra.mxu1 %v1196_v4  ;;  %507 = vmatprep.mubr.bf16.mxu1 %v1141_v5 }
 0x200   :  { %477 = vmatprep.subr.bf16.mxu1 %v1210_v10 }
 0x203   :  { %478 = vmatpush1.bf16.msra.mxu1 %v1221_v13 }
 0x204   :  { %479 = vmatprep.subr.bf16.mxu1 %v1233_v18 }
 0x207   :  { %480 = vmatpush1.bf16.msra.mxu1 %v1245_v22 }
 0x208   :  { %481 = vmatprep.subr.bf16.mxu1 %v1257_v26 }
 0x20b   :  { %482 = vmatpush1.bf16.msra.mxu1 %v1263_v27 }
 0x20c   :  { %621 = vmatprep.subr.bf16.mxu1 %v1184_v0 }
 0x2d1   :  { %v363_v11 = vpop.f32.mrb[4].mxu1 }
 0x2d2   :  { %v370_v12 = vadd.f32 %v363_v11, %v161_v8  ;;  %v365_v14 = vpop.f32.mrb[5].mxu1 }
 0x2d3   :  { %v371_v15 = vadd.f32 %v365_v14, %v163_v9  ;;  %v367_v16 = vpop.f32.mrb[6].mxu1 }
 0x2d4   :  { %v950_v17 = vmul.f32 -1.442695, %v370_v12  ;;  %v368_v19 = vpop.f32.mrb[7].mxu1 }
 0x2d5   :  { %v951_v20 = vmul.f32 -1.442695, %v371_v15 }
 0x2d6   :  { %1056 = vpow2.f32 %v950_v17 }
 0x2d7   :  { %1058 = vpow2.f32 %v951_v20 }
 0x2d8   :  { %1060 = vtanh.f32 %v371_v15 }
 0x2e0   :  { %v1057_v21 = vpop.eup %1056 }
 0x2e1   :  { %v1059_v23 = vpop.eup %1058  ;;  %v375_v24 = vadd.f32 1.0, %v1057_v21 }
 0x2e2   :  { %v382_v25 = vadd.f32 1.0, %v1059_v23  ;;  %v1061_v28 = vpop.eup %1060 }
 0x2e4   :  { %1062 = vrcp.f32 %v382_v25 }
 0x2e5   :  { %1064 = vrcp.f32 %v375_v24 }
 0x2ee   :  { %v1063_v29 = vpop.eup %1062 }
 0x2ef   :  { %v1065_v30 = vpop.eup %1064  ;;  %v385_v31 = vsel %vm211_vm4, %v1061_v28, %v1063_v29 }
 0x2f0   :  { %v387_v32 = vmul.f32 %v1065_v30, %v385_v31  ;;  %v386_v41 = vmul.f32 %v1065_v30, %v1312_v61  ;;  %v167_v61 = vadd.f32 %v166_v47, %v1295_v34 }
 0x2f2   :  { %389 = vrot.lane.b32.xlu1 %v387_v32, %s1143_s3 }
 0x364   :  { %v390_v42 = vpop.permute.xlu1 %389 }
 0x365   :  { %v392_v43 = vadd.f32 %v390_v42, %v386_v41 }
 0x367   :  { %1066 = vtanh.f32 %v392_v43 }
 0x371   :  { %v1067_v44 = vpop.eup %1066 }
 0x372   :  { %v394_v45 = vmul.f32 %v1067_v44, %v385_v31 }
 0x374   :  { %v395_v46 = vpack.c.bf16 %v394_v45, %v394_v45 }
 0x376   :  { %397 = vrot.lane.b32.xlu1 %v395_v46, %s1143_s3 }
 0x3e8   :  { %v398_v60 = vpop.permute.xlu1 %397 }
 0x3e9   :  { %952 = vmatmul.mubr.msk.bf16.vlgmr.msra.gmra.mrb[16].mxu0 %vm252_vm5, %v398_v60 }
 0x3ea   :  { %549 = vmatpush1.bf16.msra.mxu0 %v1196_v4  ;;  %580 = vmatprep.mubr.bf16.mxu0 %v1141_v5 }
 0x3eb   :  { %550 = vmatprep.subr.bf16.mxu0 %v1210_v10 }
 0x3ee   :  { %551 = vmatpush1.bf16.msra.mxu0 %v1221_v13 }
 0x3ef   :  { %552 = vmatprep.subr.bf16.mxu0 %v1233_v18 }
 0x3f2   :  { %553 = vmatpush1.bf16.msra.mxu0 %v1245_v22 }
 0x3f3   :  { %554 = vmatprep.subr.bf16.mxu0 %v1257_v26 }
 0x3f6   :  { %555 = vmatpush1.bf16.msra.mxu0 %v1263_v27 }
 0x3f7   :  { %694 = vmatprep.subr.bf16.mxu0 %v1184_v0 }
 0x4bc   :  { %v436_v63 = vpop.f32.mrb[16].mxu0 }
 0x4bd   :  { %v443_v2 = vadd.f32 %v436_v63, %v167_v61  ;;  %v438_v3 = vpop.f32.mrb[17].mxu0 }
 0x4be   :  { %v444_v6 = vadd.f32 %v438_v3, %v169_v62  ;;  %v440_v7 = vpop.f32.mrb[18].mxu0 }
 0x4bf   :  { %v953_v8 = vmul.f32 -1.442695, %v443_v2  ;;  %v441_v9 = vpop.f32.mrb[19].mxu0 }
 0x4c0   :  { %v954_v11 = vmul.f32 -1.442695, %v444_v6  ;;  %v179_v9 = vadd.f32 %v1367_v51, %v1295_v34 }
 0x4c1   :  { %1068 = vpow2.f32 %v953_v8 }
 0x4c2   :  { %1070 = vpow2.f32 %v954_v11  ;;  %v181_v11 = vadd.f32 %v1369_v53, %v1297_v35 }
 0x4c3   :  { %1072 = vtanh.f32 %v444_v6 }
 0x4cb   :  { %v1069_v12 = vpop.eup %1068 }
 0x4cc   :  { %v1071_v14 = vpop.eup %1070  ;;  %v448_v15 = vadd.f32 1.0, %v1069_v12 }
 0x4cd   :  { %v455_v16 = vadd.f32 1.0, %v1071_v14  ;;  %v1073_v17 = vpop.eup %1072 }
 0x4cf   :  { %1074 = vrcp.f32 %v455_v16 }
 0x4d0   :  { %1076 = vrcp.f32 %v448_v15 }
 0x4d9   :  { %v1075_v19 = vpop.eup %1074 }
 0x4da   :  { %v1077_v20 = vpop.eup %1076  ;;  %v458_v21 = vsel %vm211_vm4, %v1073_v17, %v1075_v19 }
 0x4db   :  { %v460_v23 = vmul.f32 %v1077_v20, %v458_v21  ;;  %v459_v24 = vmul.f32 %v1077_v20, %v392_v43 }
 0x4dd   :  { %462 = vrot.lane.b32.xlu0 %v460_v23, %s1143_s3 }
 0x54f   :  { %v463_v25 = vpop.permute.xlu0 %462 }
 0x550   :  { %v465_v28 = vadd.f32 %v463_v25, %v459_v24 }
 0x552   :  { %1078 = vtanh.f32 %v465_v28 }
 0x55c   :  { %v1079_v29 = vpop.eup %1078 }
 0x55d   :  { %v467_v30 = vmul.f32 %v1079_v29, %v458_v21 }
 0x55f   :  { %v468_v31 = vpack.c.bf16 %v467_v30, %v467_v30 }
 0x561   :  { %470 = vrot.lane.b32.xlu1 %v468_v31, %s1143_s3 }
 0x5d3   :  { %v471_v32 = vpop.permute.xlu1 %470 }
 0x5d4   :  { %955 = vmatmul.mubr.msk.bf16.vlgmr.msra.gmra.mrb[8].mxu1 %vm252_vm5, %v471_v32 }
 0x5d5   :  { %622 = vmatpush1.bf16.msra.mxu1 %v1196_v4  ;;  %653 = vmatprep.mubr.bf16.mxu1 %v1141_v5 }
 0x5d6   :  { %623 = vmatprep.subr.bf16.mxu1 %v1210_v10 }
 0x5d9   :  { %624 = vmatpush1.bf16.msra.mxu1 %v1221_v13 }
 0x5da   :  { %625 = vmatprep.subr.bf16.mxu1 %v1233_v18 }
 0x5dd   :  { %626 = vmatpush1.bf16.msra.mxu1 %v1245_v22 }
 0x5de   :  { %627 = vmatprep.subr.bf16.mxu1 %v1257_v26 }
 0x5e1   :  { %628 = vmatpush1.bf16.msra.mxu1 %v1263_v27 }
 0x5e2   :  { %767 = vmatprep.subr.bf16.mxu1 %v1184_v0 }
 0x6a7   :  { %v509_v37 = vpop.f32.mrb[8].mxu1 }
 0x6a8   :  { %v516_v38 = vadd.f32 %v509_v37, %v173_v33  ;;  %v511_v39 = vpop.f32.mrb[9].mxu1 }
 0x6a9   :  { %v517_v40 = vadd.f32 %v511_v39, %v175_v36  ;;  %v513_v41 = vpop.f32.mrb[10].mxu1 }
 0x6aa   :  { %v956_v42 = vmul.f32 -1.442695, %v516_v38  ;;  %v514_v43 = vpop.f32.mrb[11].mxu1  ;;  %v185_v41 = vadd.f32 %v1371_v54, %v1295_v34 }
 0x6ab   :  { %v957_v44 = vmul.f32 -1.442695, %v517_v40 }
 0x6ac   :  { %1080 = vpow2.f32 %v956_v42 }
 0x6ad   :  { %1082 = vpow2.f32 %v957_v44 }
 0x6ae   :  { %1084 = vtanh.f32 %v517_v40 }
 0x6b6   :  { %v1081_v45 = vpop.eup %1080 }
 0x6b7   :  { %v1083_v46 = vpop.eup %1082  ;;  %v521_v47 = vadd.f32 1.0, %v1081_v45 }
 0x6b8   :  { %v528_v0 = vadd.f32 1.0, %v1083_v46  ;;  %v1085_v48 = vpop.eup %1084 }
 0x6ba   :  { %1086 = vrcp.f32 %v528_v0 }
 0x6bb   :  { %1088 = vrcp.f32 %v521_v47 }
 0x6c4   :  { %v1087_v49 = vpop.eup %1086 }
 0x6c5   :  { %v1089_v50 = vpop.eup %1088  ;;  %v531_v60 = vsel %vm211_vm4, %v1085_v48, %v1087_v49 }
 0x6c6   :  { %v533_v61 = vmul.f32 %v1089_v50, %v531_v60  ;;  %v532_v62 = vmul.f32 %v1089_v50, %v465_v28 }
 0x6c8   :  { %535 = vrot.lane.b32.xlu0 %v533_v61, %s1143_s3 }
 0x73a   :  { %v536_v63 = vpop.permute.xlu0 %535 }
 0x73b   :  { %v538_v2 = vadd.f32 %v536_v63, %v532_v62 }
 0x73d   :  { %1090 = vtanh.f32 %v538_v2 }
 0x747   :  { %v1091_v3 = vpop.eup %1090 }
 0x748   :  { %v540_v6 = vmul.f32 %v1091_v3, %v531_v60  ;;  %v191_v3 = vadd.f32 %v1375_v56, %v1295_v34 }
 0x74a   :  { %v541_v7 = vpack.c.bf16 %v540_v6, %v540_v6  ;;  %v193_v6 = vadd.f32 %v1377_v57, %v1297_v35 }
 0x74c   :  { %543 = vrot.lane.b32.xlu1 %v541_v7, %s1143_s3 }
 0x7be   :  { %v544_v8 = vpop.permute.xlu1 %543 }
 0x7bf   :  { %958 = vmatmul.mubr.msk.bf16.vlgmr.msra.gmra.mrb[20].mxu0 %vm252_vm5, %v544_v8 }
 0x7c0   :  { %695 = vmatpush1.bf16.msra.mxu0 %v1196_v4  ;;  %726 = vmatprep.mubr.bf16.mxu0 %v1141_v5 }
 0x7c1   :  { %696 = vmatprep.subr.bf16.mxu0 %v1210_v10 }
 0x7c4   :  { %697 = vmatpush1.bf16.msra.mxu0 %v1221_v13 }
 0x7c5   :  { %698 = vmatprep.subr.bf16.mxu0 %v1233_v18 }
 0x7c8   :  { %699 = vmatpush1.bf16.msra.mxu0 %v1245_v22 }
 0x7c9   :  { %700 = vmatprep.subr.bf16.mxu0 %v1257_v26 }
 0x7cc   :  { %701 = vmatpush1.bf16.msra.mxu0 %v1263_v27 }
 0x892   :  { %v582_v12 = vpop.f32.mrb[20].mxu0 }
 0x893   :  { %v589_v14 = vadd.f32 %v582_v12, %v179_v9  ;;  %v584_v15 = vpop.f32.mrb[21].mxu0 }
 0x894   :  { %v590_v16 = vadd.f32 %v584_v15, %v181_v11  ;;  %v586_v17 = vpop.f32.mrb[22].mxu0 }
 0x895   :  { %v959_v19 = vmul.f32 -1.442695, %v589_v14  ;;  %v587_v20 = vpop.f32.mrb[23].mxu0 }
 0x896   :  { %v960_v21 = vmul.f32 -1.442695, %v590_v16 }
 0x897   :  { %1092 = vpow2.f32 %v959_v19 }
 0x898   :  { %1094 = vpow2.f32 %v960_v21 }
 0x899   :  { %1096 = vtanh.f32 %v590_v16 }
 0x8a1   :  { %v1093_v23 = vpop.eup %1092 }
 0x8a2   :  { %v1095_v24 = vpop.eup %1094  ;;  %v594_v25 = vadd.f32 1.0, %v1093_v23 }
 0x8a3   :  { %v601_v28 = vadd.f32 1.0, %v1095_v24  ;;  %v1097_v51 = vpop.eup %1096 }
 0x8a5   :  { %1098 = vrcp.f32 %v601_v28 }
 0x8a6   :  { %1100 = vrcp.f32 %v594_v25 }
 0x8af   :  { %v1099_v29 = vpop.eup %1098 }
 0x8b0   :  { %v1101_v53 = vpop.eup %1100  ;;  %v604_v30 = vsel %vm211_vm4, %v1097_v51, %v1099_v29 }
 0x8b1   :  { %v606_v31 = vmul.f32 %v1101_v53, %v604_v30  ;;  %v605_v32 = vmul.f32 %v1101_v53, %v538_v2 }
 0x8b3   :  { %608 = vrot.lane.b32.xlu0 %v606_v31, %s1143_s3 }
 0x925   :  { %v609_v33 = vpop.permute.xlu0 %608 }
 0x926   :  { %v611_v36 = vadd.f32 %v609_v33, %v605_v32  ;;  %v197_v33 = vadd.f32 %v1379_v58, %v1295_v34 }
 0x928   :  { %1102 = vtanh.f32 %v611_v36 }
 0x932   :  { %v1103_v37 = vpop.eup %1102 }
 0x933   :  { %v613_v38 = vmul.f32 %v1103_v37, %v604_v30 }
 0x935   :  { %v614_v39 = vpack.c.bf16 %v613_v38, %v613_v38 }
 0x937   :  { %616 = vrot.lane.b32.xlu1 %v614_v39, %s1143_s3 }
 0x9a9   :  { %v617_v40 = vpop.permute.xlu1 %616 }
 0x9aa   :  { %961 = vmatmul.mubr.msk.bf16.vlgmr.msra.gmra.mrb[12].mxu1 %vm252_vm5, %v617_v40 }
 0x9ab   :  { %768 = vmatpush1.bf16.msra.mxu1 %v1196_v4  ;;  %799 = vmatprep.mubr.bf16.mxu1 %v1141_v5  ;;  %v187_v4 = vadd.f32 %v1373_v55, %v1297_v35 }
 0x9ac   :  { %769 = vmatprep.subr.bf16.mxu1 %v1210_v10 }
 0x9af   :  { %770 = vmatpush1.bf16.msra.mxu1 %v1221_v13 }
 0x9b0   :  { %771 = vmatprep.subr.bf16.mxu1 %v1233_v18 }
 0x9b3   :  { %772 = vmatpush1.bf16.msra.mxu1 %v1245_v22 }
 0x9b4   :  { %773 = vmatprep.subr.bf16.mxu1 %v1257_v26 }
 0x9b7   :  { %774 = vmatpush1.bf16.msra.mxu1 %v1263_v27 }
 0xa7d   :  { %v655_v42 = vpop.f32.mrb[12].mxu1 }
 0xa7e   :  { %v662_v5 = vadd.f32 %v655_v42, %v185_v41  ;;  %v657_v43 = vpop.f32.mrb[13].mxu1 }
 0xa7f   :  { %v663_v10 = vadd.f32 %v657_v43, %v187_v4  ;;  %v659_v44 = vpop.f32.mrb[14].mxu1 }
 0xa80   :  { %v962_v13 = vmul.f32 -1.442695, %v662_v5  ;;  %v660_v45 = vpop.f32.mrb[15].mxu1 }
 0xa81   :  { %v963_v18 = vmul.f32 -1.442695, %v663_v10 }
 0xa82   :  { %1104 = vpow2.f32 %v962_v13 }
 0xa83   :  { %1106 = vpow2.f32 %v963_v18  ;;  %v1144_v18 = vmov 0.0|0.0  }
 0xa84   :  { %1108 = vtanh.f32 %v663_v10  ;;  %1014 = vmatprep.subr.bf16.mxu0 %v1144_v18 }
 0xa8c   :  { %v1105_v22 = vpop.eup %1104 }
 0xa8d   :  { %v1107_v26 = vpop.eup %1106  ;;  %v667_v46 = vadd.f32 1.0, %v1105_v22  ;;  %v833_v22 = vld [vmem:[%s1505_s4] sm:$0xff] }
 0xa8e   :  { %v674_v27 = vadd.f32 1.0, %v1107_v26  ;;  %v1109_v54 = vpop.eup %1108  ;;  %v834_v26 = vld [vmem:[%s1505_s4 + $0x8] sm:$0xff] }
 0xa8f   :  { %v1015_v52 = vpack.c.bf16 %v834_v26, %v833_v22 }
 0xa90   :  { %1110 = vrcp.f32 %v674_v27  ;;  %v836_v27 = vld [vmem:[%s1505_s4 + $0x18] sm:$0xff] }
 0xa91   :  { %1112 = vrcp.f32 %v667_v46  ;;  %v835_v46 = vld [vmem:[%s1505_s4 + $0x10] sm:$0xff] }
 0xa9a   :  { %v1111_v47 = vpop.eup %1110 }
 0xa9b   :  { %v1113_v55 = vpop.eup %1112  ;;  %v677_v0 = vsel %vm211_vm4, %v1109_v54, %v1111_v47  ;;  %v1018_v54 = vpack.c.bf16 %v836_v27, %v835_v46  ;;  %v837_v47 = vld [vmem:[%s1505_s4 + $0x20] sm:$0xff] }
 0xa9c   :  { %v679_v48 = vmul.f32 %v1113_v55, %v677_v0  ;;  %v678_v49 = vmul.f32 %v1113_v55, %v611_v36  ;;  %v199_v36 = vadd.f32 %v1381_v59, %v1297_v35  ;;  %v838_v55 = vld [vmem:[%s1505_s4 + $0x28] sm:$0xff] }
 0xa9e   :  { %681 = vrot.lane.b32.xlu0 %v679_v48, %s1143_s3  ;;  %v840_v48 = vld [vmem:[%s1505_s4 + $0x38] sm:$0xff] }
 0xb10   :  { %v682_v50 = vpop.permute.xlu0 %681 }
 0xb11   :  { %v684_v60 = vadd.f32 %v682_v50, %v678_v49 }
 0xb13   :  { %1114 = vtanh.f32 %v684_v60 }
 0xb1d   :  { %v1115_v61 = vpop.eup %1114 }
 0xb1e   :  { %v686_v62 = vmul.f32 %v1115_v61, %v677_v0  ;;  %v1021_v0 = vpack.c.bf16 %v838_v55, %v837_v47 }
 0xb20   :  { %v687_v63 = vpack.c.bf16 %v686_v62, %v686_v62 }
 0xb22   :  { %689 = vrot.lane.b32.xlu1 %v687_v63, %s1143_s3 }
 0xb94   :  { %v690_v2 = vpop.permute.xlu1 %689 }
 0xb95   :  { %964 = vmatmul.mubr.msk.bf16.vlgmr.msra.gmra.mrb[24].mxu0 %vm252_vm5, %v690_v2 }
 0xb96   :  { %997 = vmatprep.mubr.msk.f32.mxu0 %vm1145_vm6, %v1140_v1  ;;  %1016 = vmatpush3.bf16.msra.mxu0 %v1015_v52  ;;  %v839_v1 = vld [vmem:[%s1505_s4 + $0x30] sm:$0xff] }
 0xb97   :  { %1017 = vmatprep.subr.bf16.mxu0 %v1144_v18  ;;  %v1024_v49 = vpack.c.bf16 %v840_v48, %v839_v1 }
 0xb9a   :  { %1019 = vmatpush3.bf16.msra.mxu0 %v1018_v54 }
 0xb9b   :  { %1020 = vmatprep.subr.bf16.mxu0 %v1144_v18 }
 0xb9e   :  { %1022 = vmatpush3.bf16.msra.mxu0 %v1021_v0 }
 0xb9f   :  { %1023 = vmatprep.subr.bf16.mxu0 %v1144_v18 }
 0xba2   :  { %1025 = vmatpush3.bf16.msra.mxu0 %v1024_v49 }
 0xc68   :  { %v728_v7 = vpop.f32.mrb[24].mxu0 }
 0xc69   :  { %v735_v8 = vadd.f32 %v728_v7, %v191_v3  ;;  %v730_v9 = vpop.f32.mrb[25].mxu0  ;;  %v970_v3 = vld [vmem:[%s1506_s5] ss:$0 sm:$0xff] }
 0xc6a   :  { %v736_v11 = vadd.f32 %v730_v9, %v193_v6  ;;  %v732_v12 = vpop.f32.mrb[26].mxu0 }
 0xc6b   :  { %v965_v14 = vmul.f32 -1.442695, %v735_v8  ;;  %v733_v15 = vpop.f32.mrb[27].mxu0 }
 0xc6c   :  { %v966_v16 = vmul.f32 -1.442695, %v736_v11 }
 0xc6d   :  { %1116 = vpow2.f32 %v965_v14 }
 0xc6e   :  { %1118 = vpow2.f32 %v966_v16 }
 0xc6f   :  { %1120 = vtanh.f32 %v736_v11 }
 0xc77   :  { %v1117_v17 = vpop.eup %1116 }
 0xc78   :  { %v1119_v19 = vpop.eup %1118  ;;  %v740_v20 = vadd.f32 1.0, %v1117_v17 }
 0xc79   :  { %v747_v21 = vadd.f32 1.0, %v1119_v19  ;;  %v1121_v56 = vpop.eup %1120 }
 0xc7b   :  { %1122 = vrcp.f32 %v747_v21 }
 0xc7c   :  { %1124 = vrcp.f32 %v740_v20 }
 0xc85   :  { %v1123_v23 = vpop.eup %1122 }
 0xc86   :  { %v1125_v57 = vpop.eup %1124  ;;  %v750_v24 = vsel %vm211_vm4, %v1121_v56, %v1123_v23 }
 0xc87   :  { %v752_v25 = vmul.f32 %v1125_v57, %v750_v24  ;;  %v751_v28 = vmul.f32 %v1125_v57, %v684_v60 }
 0xc89   :  { %754 = vrot.lane.b32.xlu0 %v752_v25, %s1143_s3 }
 0xcfb   :  { %v755_v51 = vpop.permute.xlu0 %754 }
 0xcfc   :  { %v757_v29 = vadd.f32 %v755_v51, %v751_v28 }
 0xcfe   :  { %1126 = vtanh.f32 %v757_v29 }
 0xd08   :  { %v1127_v53 = vpop.eup %1126 }
 0xd09   :  { %v759_v30 = vmul.f32 %v1127_v53, %v750_v24 }
 0xd0b   :  { %v760_v31 = vpack.c.bf16 %v759_v30, %v759_v30 }
 0xd0d   :  { %762 = vrot.lane.b32.xlu1 %v760_v31, %s1143_s3 }
 0xd7f   :  { %v763_v32 = vpop.permute.xlu1 %762 }
 0xd80   :  { %967 = vmatmul.mubr.msk.bf16.vlgmr.msra.gmra.mrb[16].mxu1 %vm252_vm5, %v763_v32 }
 0xe53   :  { %v801_v37 = vpop.f32.mrb[16].mxu1 }
 0xe54   :  { %v808_v38 = vadd.f32 %v801_v37, %v197_v33  ;;  %v803_v39 = vpop.f32.mrb[17].mxu1 }
 0xe55   :  { %v809_v40 = vadd.f32 %v803_v39, %v199_v36  ;;  %v805_v41 = vpop.f32.mrb[18].mxu1 }
 0xe56   :  { %v968_v4 = vmul.f32 -1.442695, %v808_v38  ;;  %v806_v42 = vpop.f32.mrb[19].mxu1 }
 0xe57   :  { %v969_v5 = vmul.f32 -1.442695, %v809_v40 }
 0xe58   :  { %1128 = vpow2.f32 %v968_v4 }
 0xe59   :  { %1130 = vpow2.f32 %v969_v5 }
 0xe5a   :  { %1132 = vtanh.f32 %v809_v40 }
 0xe62   :  { %v1129_v43 = vpop.eup %1128 }
 0xe63   :  { %v1131_v10 = vpop.eup %1130  ;;  %v813_v44 = vadd.f32 1.0, %v1129_v43 }
 0xe64   :  { %v820_v13 = vadd.f32 1.0, %v1131_v10  ;;  %v1133_v34 = vpop.eup %1132 }
 0xe66   :  { %1134 = vrcp.f32 %v820_v13 }
 0xe67   :  { %1136 = vrcp.f32 %v813_v44 }
 0xe70   :  { %v1135_v58 = vpop.eup %1134 }
 0xe71   :  { %v1137_v35 = vpop.eup %1136  ;;  %v823_v59 = vsel %vm211_vm4, %v1133_v34, %v1135_v58 }
 0xe72   :  { %v825_v45 = vmul.f32 %v1137_v35, %v823_v59  ;;  %v824_v50 = vmul.f32 %v1137_v35, %v757_v29 }
 0xe74   :  { %827 = vrot.lane.b32.xlu0 %v825_v45, %s1143_s3 }
 0xee6   :  { %v828_v60 = vpop.permute.xlu0 %827 }
 0xee7   :  { %v830_v61 = vadd.f32 %v828_v60, %v824_v50 }
 0xee9   :  { %1138 = vtanh.f32 %v830_v61 }
 0xef3   :  { %v1139_v62 = vpop.eup %1138 }
 0xef4   :  { %v832_v63 = vmul.f32 %v1139_v62, %v823_v59 }
 0xef6   :  { %849 = vrot.lane.b32.xlu1 %v832_v63, %s1143_s3 }
 0xf68   :  { %v850_v2 = vpop.permute.xlu1 %849 }
 0xf69   :  { %998 = vmatmul.mubr.msk.f32.vlgmr.msra.gmra.mrb[28].mxu0 %vm252_vm5, %v850_v2 }
0x103c   :  { %v919_v6 = vpop.f32.mrb[28].mxu0 }
0x103d   :  { %v920_v7 = vadd.f32 %v970_v3, %v919_v6  ;;  %v999_v8 = vpop.f32.mrb[29].mxu0 }
0x103f   :  { %924 = vst.msk [vmem:[%s1507_s6] sm:$0xff] %vm923_vm7, %v920_v7 }

</bundles_post_ra>
